<compile_context>
chip_gen: v7x
topology: tpu7x:2x2x1
jax: 0.10.0
libtpu: 0.0.40
codegen_flags: <defaults>
</compile_context>

<pallas_src>
import functools

import jax
import jax.numpy as jnp
from jax.experimental import pallas as pl
from jax.experimental.pallas import tpu as pltpu


_LANE = 128     # feature dims padded to multiples of the 128-lane vreg width
_SUBLANE = 8    # f32 sublane granularity for the batch dimension


def _round_up(x, m):
    return (x + m - 1) // m * m


def _fused_mlp_kernel(x_ref, *refs, n_layers):
    """Fused [Linear+ReLU]*(n-1) -> Linear.

    refs = (w0, b0, w1, b1, ..., w_{L-1}, b_{L-1}, o_ref)
      x_ref : (TB, D0_pad)        f32
      w_i   : (Di_pad, Di+1_pad)  bf16 (pre-cast in wrapper)
      b_i   : (1, Di+1_pad)       f32
      o_ref : (TB, DL_pad)        f32
    Activations stay in VMEM/vregs for the whole kernel.
    """
    o_ref = refs[-1]
    act = x_ref[...].astype(jnp.float32)
    for i in range(n_layers):
        w = refs[2 * i][...]
        b = refs[2 * i + 1][...]
        # MXU matmul in bf16, f32 accumulation.
        acc = jnp.dot(act.astype(jnp.bfloat16), w,
                      preferred_element_type=jnp.float32)
        acc = acc + b                      # broadcast (1, Dout) over batch, f32 VPU
        if i < n_layers - 1:
            acc = jnp.maximum(acc, 0.0)    # ReLU on hidden layers only
        act = acc
    o_ref[...] = act.astype(o_ref.dtype)


def init_fully_connected_params(key, input_size, hidden_size, output_size,
                                dtype=jnp.float32):
    """Deterministic synthetic parameters (same shapes as the PyTorch module)."""
    params = []
    sizes = [input_size] + list(hidden_size) + [output_size]
    for i in range(len(sizes) - 1):
        fan_in, fan_out = sizes[i], sizes[i + 1]
        key, wk, bk = jax.random.split(key, 3)
        bound = 1.0 / jnp.sqrt(fan_in)
        # stored as (in, out); PyTorch stores (out, in) — equivalent math via x @ W
        w = jax.random.uniform(wk, (fan_in, fan_out), dtype, -bound, bound)
        b = jax.random.uniform(bk, (fan_out,), dtype, -bound, bound)
        params.append((w, b))
    return params


def fully_connected_forward(params, x):
    """Forward pass: hidden layers with ReLU, last layer without — one fused kernel."""
    batch, in_features = x.shape
    n_layers = len(params)
    out_features = params[-1][0].shape[1]

    # Padded (lane-dense) feature sizes per layer boundary.
    dims = [in_features] + [w.shape[1] for (w, _) in params]
    dims_pad = [_round_up(d, _LANE) for d in dims]

    # Batch padding + batch tile size (grid axis, "parallel" for v7x megacore).
    if batch >= _LANE:
        b_pad = _round_up(batch, _LANE)
        tb = _LANE
    else:
        b_pad = _round_up(batch, _SUBLANE)
        tb = b_pad

    # Zero-pad input; zero-padded W rows/cols + zero-padded bias lanes keep the
    # padded columns exactly zero through every layer, so slicing at the end is exact.
    x_p = jnp.zeros((b_pad, dims_pad[0]), jnp.float32)
    x_p = x_p.at[:batch, :in_features].set(x.astype(jnp.float32))

    kernel_inputs = [x_p]
    in_specs = [pl.BlockSpec((tb, dims_pad[0]), lambda i: (i, 0))]
    for li, (w, b) in enumerate(params):
        din, dout = w.shape
        w_p = jnp.zeros((dims_pad[li], dims_pad[li + 1]), jnp.bfloat16)
        w_p = w_p.at[:din, :dout].set(w.astype(jnp.bfloat16))
        b_p = jnp.zeros((1, dims_pad[li + 1]), jnp.float32)
        b_p = b_p.at[0, :dout].set(b.astype(jnp.float32))
        kernel_inputs += [w_p, b_p]
        # Weights/biases: same block for every grid step -> fetched once, VMEM-resident.
        in_specs.append(pl.BlockSpec((dims_pad[li], dims_pad[li + 1]),
                                     lambda i: (0, 0)))
        in_specs.append(pl.BlockSpec((1, dims_pad[li + 1]), lambda i: (0, 0)))

    out_specs = pl.BlockSpec((tb, dims_pad[-1]), lambda i: (i, 0))

    out_p = pl.pallas_call(
        functools.partial(_fused_mlp_kernel, n_layers=n_layers),
        out_shape=jax.ShapeDtypeStruct((b_pad, dims_pad[-1]), jnp.float32),
        grid=(b_pad // tb,),
        in_specs=in_specs,
        out_specs=out_specs,
        compiler_params=pltpu.CompilerParams(
            dimension_semantics=("parallel",),       # shard batch tiles across TCs (v7x)
            vmem_limit_bytes=32 * 1024 * 1024,       # safe on v5e/v6e/v7x
        ),
    )(*kernel_inputs)

    return out_p[:batch, :out_features]


def _reference_forward(params, x):
    """Pure-JAX reference with the same bf16-matmul / f32-accumulate recipe."""
    act = x.astype(jnp.float32)
    n = len(params)
    for i, (w, b) in enumerate(params):
        acc = jnp.dot(act.astype(jnp.bfloat16), w.astype(jnp.bfloat16),
                      preferred_element_type=jnp.float32) + b.astype(jnp.float32)
        act = jnp.maximum(acc, 0.0) if i < n - 1 else acc
    return act


if __name__ == "__main__":
    key = jax.random.PRNGKey(0)
    batch = 8
    input_size = 32
    hidden_size = [64, 32]
    output_size = 16

    pkey, xkey = jax.random.split(key)
    params = init_fully_connected_params(pkey, input_size, hidden_size, output_size)
    x = jax.random.normal(xkey, (batch, input_size), jnp.float32)

    fwd = jax.jit(fully_connected_forward)
    out = jax.block_until_ready(fwd(params, x))

    ref = _reference_forward(params, x)
    assert out.shape == (batch, output_size), out.shape
    assert jnp.allclose(out, ref, atol=1e-2, rtol=1e-2), "mismatch vs reference"

    print("KERNEL_OK")
</pallas_src>

<mosaic_0001>
module attributes {stable_mosaic.version = 11 : i64} {
  func.func @_fused_mlp_kernel(%arg0: i32, %arg1: memref<8x128xf32, #tpu.memory_space<vmem>>, %arg2: memref<128x128xbf16, #tpu.memory_space<vmem>>, %arg3: memref<1x128xf32, #tpu.memory_space<vmem>>, %arg4: memref<128x128xbf16, #tpu.memory_space<vmem>>, %arg5: memref<1x128xf32, #tpu.memory_space<vmem>>, %arg6: memref<128x128xbf16, #tpu.memory_space<vmem>>, %arg7: memref<1x128xf32, #tpu.memory_space<vmem>>, %arg8: memref<8x128xf32, #tpu.memory_space<vmem>>) attributes {dimension_semantics = [#tpu.dimension_semantics<parallel>], iteration_bounds = array<i64: 1>, scalar_prefetch = 0 : i64, scratch_operands = 0 : i64, tpu.core_type = #tpu.core_type<tc>, window_params = [{transform_indices = @transform_0, window_bounds = array<i64: 8, 128>}, {pipeline_mode = #tpu.pipeline_mode<synchronous>, transform_indices = @transform_1, window_bounds = array<i64: 128, 128>}, {pipeline_mode = #tpu.pipeline_mode<synchronous>, transform_indices = @transform_2, window_bounds = array<i64: 1, 128>}, {pipeline_mode = #tpu.pipeline_mode<synchronous>, transform_indices = @transform_3, window_bounds = array<i64: 128, 128>}, {pipeline_mode = #tpu.pipeline_mode<synchronous>, transform_indices = @transform_4, window_bounds = array<i64: 1, 128>}, {pipeline_mode = #tpu.pipeline_mode<synchronous>, transform_indices = @transform_5, window_bounds = array<i64: 128, 128>}, {pipeline_mode = #tpu.pipeline_mode<synchronous>, transform_indices = @transform_6, window_bounds = array<i64: 1, 128>}, {transform_indices = @transform_7, window_bounds = array<i64: 8, 128>}]} {
    %c0 = arith.constant 0 : index
    %c0_0 = arith.constant 0 : index
    %0 = vector.load %arg1[%c0, %c0_0] : memref<8x128xf32, #tpu.memory_space<vmem>>, vector<8x128xf32>
    %c0_1 = arith.constant 0 : index
    %c0_2 = arith.constant 0 : index
    %1 = vector.load %arg2[%c0_1, %c0_2] : memref<128x128xbf16, #tpu.memory_space<vmem>>, vector<128x128xbf16>
    %c0_3 = arith.constant 0 : index
    %c0_4 = arith.constant 0 : index
    %2 = vector.load %arg3[%c0_3, %c0_4] : memref<1x128xf32, #tpu.memory_space<vmem>>, vector<1x128xf32>
    %3 = arith.truncf %0 : vector<8x128xf32> to vector<8x128xbf16>
    %cst = arith.constant dense<0.000000e+00> : vector<8x128xf32>
    %4 = tpu.matmul %3, %1, %cst {dimension_numbers = #tpu.dot_dimension_numbers<[1], [0], [0], [1], [0, 0, 1, 1], [], []>} : vector<8x128xbf16>, vector<128x128xbf16>, vector<8x128xf32> -> vector<8x128xf32>
    %5 = vector.broadcast %2 : vector<1x128xf32> to vector<8x128xf32>
    %6 = arith.addf %4, %5 : vector<8x128xf32>
    %cst_5 = arith.constant 0.000000e+00 : f32
    %7 = vector.broadcast %cst_5 : f32 to vector<8x128xf32>
    %8 = arith.maximumf %6, %7 : vector<8x128xf32>
    %c0_6 = arith.constant 0 : index
    %c0_7 = arith.constant 0 : index
    %9 = vector.load %arg4[%c0_6, %c0_7] : memref<128x128xbf16, #tpu.memory_space<vmem>>, vector<128x128xbf16>
    %c0_8 = arith.constant 0 : index
    %c0_9 = arith.constant 0 : index
    %10 = vector.load %arg5[%c0_8, %c0_9] : memref<1x128xf32, #tpu.memory_space<vmem>>, vector<1x128xf32>
    %11 = arith.truncf %8 : vector<8x128xf32> to vector<8x128xbf16>
    %cst_10 = arith.constant dense<0.000000e+00> : vector<8x128xf32>
    %12 = tpu.matmul %11, %9, %cst_10 {dimension_numbers = #tpu.dot_dimension_numbers<[1], [0], [0], [1], [0, 0, 1, 1], [], []>} : vector<8x128xbf16>, vector<128x128xbf16>, vector<8x128xf32> -> vector<8x128xf32>
    %13 = vector.broadcast %10 : vector<1x128xf32> to vector<8x128xf32>
    %14 = arith.addf %12, %13 : vector<8x128xf32>
    %cst_11 = arith.constant 0.000000e+00 : f32
    %15 = vector.broadcast %cst_11 : f32 to vector<8x128xf32>
    %16 = arith.maximumf %14, %15 : vector<8x128xf32>
    %c0_12 = arith.constant 0 : index
    %c0_13 = arith.constant 0 : index
    %17 = vector.load %arg6[%c0_12, %c0_13] : memref<128x128xbf16, #tpu.memory_space<vmem>>, vector<128x128xbf16>
    %c0_14 = arith.constant 0 : index
    %c0_15 = arith.constant 0 : index
    %18 = vector.load %arg7[%c0_14, %c0_15] : memref<1x128xf32, #tpu.memory_space<vmem>>, vector<1x128xf32>
    %19 = arith.truncf %16 : vector<8x128xf32> to vector<8x128xbf16>
    %cst_16 = arith.constant dense<0.000000e+00> : vector<8x128xf32>
    %20 = tpu.matmul %19, %17, %cst_16 {dimension_numbers = #tpu.dot_dimension_numbers<[1], [0], [0], [1], [0, 0, 1, 1], [], []>} : vector<8x128xbf16>, vector<128x128xbf16>, vector<8x128xf32> -> vector<8x128xf32>
    %21 = vector.broadcast %18 : vector<1x128xf32> to vector<8x128xf32>
    %22 = arith.addf %20, %21 : vector<8x128xf32>
    %c0_17 = arith.constant 0 : index
    %c0_18 = arith.constant 0 : index
    %23 = vector.load %arg8[%c0_17, %c0_18] : memref<8x128xf32, #tpu.memory_space<vmem>>, vector<8x128xf32>
    tpu.vector_store %arg8[%c0_17, %c0_18], %22 {strides = array<i32>} : memref<8x128xf32, #tpu.memory_space<vmem>>, vector<8x128xf32>,
    return
  }
  func.func @transform_0(%arg0: i32) -> (i32, i32) {
    %c0_i32 = arith.constant 0 : i32
    %c0_i32_0 = arith.constant 0 : i32
    return %arg0, %c0_i32 : i32, i32
  }
  func.func @transform_1(%arg0: i32) -> (i32, i32) {
    %c0_i32 = arith.constant 0 : i32
    %c0_i32_0 = arith.constant 0 : i32
    %c0_i32_1 = arith.constant 0 : i32
    return %c0_i32, %c0_i32_0 : i32, i32
  }
  func.func @transform_2(%arg0: i32) -> (i32, i32) {
    %c0_i32 = arith.constant 0 : i32
    %c0_i32_0 = arith.constant 0 : i32
    %c0_i32_1 = arith.constant 0 : i32
    return %c0_i32, %c0_i32_0 : i32, i32
  }
  func.func @transform_3(%arg0: i32) -> (i32, i32) {
    %c0_i32 = arith.constant 0 : i32
    %c0_i32_0 = arith.constant 0 : i32
    %c0_i32_1 = arith.constant 0 : i32
    return %c0_i32, %c0_i32_0 : i32, i32
  }
  func.func @transform_4(%arg0: i32) -> (i32, i32) {
    %c0_i32 = arith.constant 0 : i32
    %c0_i32_0 = arith.constant 0 : i32
    %c0_i32_1 = arith.constant 0 : i32
    return %c0_i32, %c0_i32_0 : i32, i32
  }
  func.func @transform_5(%arg0: i32) -> (i32, i32) {
    %c0_i32 = arith.constant 0 : i32
    %c0_i32_0 = arith.constant 0 : i32
    %c0_i32_1 = arith.constant 0 : i32
    return %c0_i32, %c0_i32_0 : i32, i32
  }
  func.func @transform_6(%arg0: i32) -> (i32, i32) {
    %c0_i32 = arith.constant 0 : i32
    %c0_i32_0 = arith.constant 0 : i32
    %c0_i32_1 = arith.constant 0 : i32
    return %c0_i32, %c0_i32_0 : i32, i32
  }
  func.func @transform_7(%arg0: i32) -> (i32, i32) {
    %c0_i32 = arith.constant 0 : i32
    %c0_i32_0 = arith.constant 0 : i32
    return %arg0, %c0_i32 : i32, i32
  }
}

</mosaic_0001>

<bundles_post_ra>
// kernel: fully_connected_forward.1
= control target key start
LH: loop header
LB: loop body
LE: loop exit
PB: predicated region body
PF: predicated region fallthrough
CT: control target
= control target key end

     0   :  { %v547_v1 = vmov 0.0   ;;  %vm548_vm0 = vmmov 0   ;;  %s716_s0 = inlined_call_operand.vmem [shape: f32[8,128], index: 0, kind: input, shape index: {}]   ;;  %s717_s1 = inlined_call_operand.vmem [shape: bf16[128,128], index: 1, kind: input, shape index: {}]   ;;  %s718_s2 = inlined_call_operand.vmem [shape: f32[1,128], index: 2, kind: input, shape index: {}]   ;;  %s719_s3 = inlined_call_operand.vmem [shape: bf16[128,128], index: 3, kind: input, shape index: {}]   ;;  %s720_s4 = inlined_call_operand.vmem [shape: f32[1,128], index: 4, kind: input, shape index: {}]   ;;  %s721_s5 = inlined_call_operand.vmem [shape: bf16[128,128], index: 5, kind: input, shape index: {}]   ;;  %s722_s6 = inlined_call_operand.vmem [shape: f32[1,128], index: 6, kind: input, shape index: {}]   ;;  %s723_s7 = inlined_call_operand.hbm [shape: f32[8,128], index: 7, kind: output, shape index: {}]  }
   0x1   :  { %v499_v0 = vld [vmem:[%s717_s1] sm:$0xff]   ;;  %436 = vmatprep.subr.bf16.mxu0 %v547_v1  ;;  %456 = vmatprep.subr.bf16.mxu1 %v547_v1  ;;  %v500_v2 = vld [vmem:[%s717_s1 + $0x8] sm:$0xff]   ;;  %v501_v3 = vld [vmem:[%s717_s1 + $0x10] sm:$0xff]  }
   0x2   :  { %437 = vmatpush3.bf16.msra.mxu0 %v499_v0  ;;  %452 = vmatprep.mubr.msk.bf16.mxu0 %vm548_vm0, %v547_v1  ;;  %v507_v4 = vld [vmem:[%s719_s3] sm:$0xff]   ;;  %v502_v5 = vld [vmem:[%s717_s1 + $0x18] sm:$0xff]   ;;  %v508_v6 = vld [vmem:[%s719_s3 + $0x8] sm:$0xff]  }
   0x3   :  { %438 = vmatprep.subr.bf16.mxu0 %v547_v1  ;;  %472 = vmatprep.mubr.msk.bf16.mxu1 %vm548_vm0, %v547_v1  ;;  %v503_v7 = vld [vmem:[%s717_s1 + $0x20] sm:$0xff]   ;;  %v509_v8 = vld [vmem:[%s719_s3 + $0x10] sm:$0xff]   ;;  %v504_v9 = vld [vmem:[%s717_s1 + $0x28] sm:$0xff]  }
   0x4   :  { %457 = vmatpush3.bf16.msra.mxu1 %v507_v4  ;;  %v510_v10 = vld [vmem:[%s719_s3 + $0x18] sm:$0xff]  }
   0x5   :  { %458 = vmatprep.subr.bf16.mxu1 %v547_v1 }
   0x6   :  { %439 = vmatpush3.bf16.msra.mxu0 %v500_v2 }
   0x7   :  { %440 = vmatprep.subr.bf16.mxu0 %v547_v1 }
   0x8   :  { %459 = vmatpush3.bf16.msra.mxu1 %v508_v6 }
   0x9   :  { %460 = vmatprep.subr.bf16.mxu1 %v547_v1 }
   0xa   :  { %441 = vmatpush3.bf16.msra.mxu0 %v501_v3 }
   0xb   :  { %442 = vmatprep.subr.bf16.mxu0 %v547_v1 }
   0xc   :  { %461 = vmatpush3.bf16.msra.mxu1 %v509_v8 }
   0xd   :  { %462 = vmatprep.subr.bf16.mxu1 %v547_v1 }
   0xe   :  { %443 = vmatpush3.bf16.msra.mxu0 %v502_v5 }
   0xf   :  { %444 = vmatprep.subr.bf16.mxu0 %v547_v1 }
  0x12   :  { %445 = vmatpush3.bf16.msra.mxu0 %v503_v7 }
  0x13   :  { %446 = vmatprep.subr.bf16.mxu0 %v547_v1 }
  0x14   :  { %12 = vsyncpa [#allocation3], 0  ;;  %v505_v11 = vld [vmem:[%s717_s1 + $0x30] sm:$0xff]   ;;  %463 = vmatpush3.bf16.msra.mxu1 %v510_v10  ;;  %v511_v12 = vld [vmem:[%s719_s3 + $0x20] sm:$0xff]   ;;  %s549_s30 = smov [#allocation2]  }
  0x15   :  { %464 = vmatprep.subr.bf16.mxu1 %v547_v1  ;;  %v506_v13 = vld [vmem:[%s717_s1 + $0x38] sm:$0xff]   ;;  %v28_v14 = vld [vmem:[%s716_s0] sm:$0xff]  ;;  %v512_v15 = vld [vmem:[%s719_s3 + $0x28] sm:$0xff]   ;;  %s374_s0 = sshll.u32 %s549_s30, 4  ;;  %s375_s0 = int_to_ptr.vmem [resolvable:$true] %s374_s0 }
  0x16   :  { %447 = vmatpush3.bf16.msra.mxu0 %v504_v9  ;;  %v46_v16 = vpack.c.bf16 %v28_v14, %v28_v14  ;;  %v513_v17 = vld [vmem:[%s719_s3 + $0x30] sm:$0xff]   ;;  %v514_v18 = vld [vmem:[%s719_s3 + $0x38] sm:$0xff]   ;;  %v515_v19 = vld [vmem:[%s721_s5] sm:$0xff]   ;;  %p528_p1 = scmp.lt.s32.totalorder %s375_s0, %s375_s0 }
  0x17   :  { %448 = vmatprep.subr.bf16.mxu0 %v547_v1  ;;  %v516_v20 = vld [vmem:[%s721_s5 + $0x8] sm:$0xff]   ;;  %v517_v21 = vld [vmem:[%s721_s5 + $0x10] sm:$0xff]   ;;  %v518_v22 = vld [vmem:[%s721_s5 + $0x18] sm:$0xff]  }
  0x18   :  { %465 = vmatpush3.bf16.msra.mxu1 %v511_v12  ;;  %v519_v23 = vld [vmem:[%s721_s5 + $0x20] sm:$0xff]   ;;  %v520_v24 = vld [vmem:[%s721_s5 + $0x28] sm:$0xff]   ;;  %v521_v33 = vld [vmem:[%s721_s5 + $0x30] sm:$0xff]  }
  0x19   :  { %466 = vmatprep.subr.bf16.mxu1 %v547_v1  ;;  %v382_v25 = vld [vmem:[%s718_s2] ss:$0 sm:$0xff]  ;;  %v522_v34 = vld [vmem:[%s721_s5 + $0x38] sm:$0xff]  }
  0x1a   :  { %449 = vmatpush3.bf16.msra.mxu0 %v505_v11  ;;  %v391_v35 = vld [vmem:[%s720_s4] ss:$0 sm:$0xff]  ;;  %s523_s4 = scalar_lea.vmem %s375_s0, 128 }
  0x1b   :  { %450 = vmatprep.subr.bf16.mxu0 %v547_v1  ;;  %v400_v43 = vld [vmem:[%s722_s6] ss:$0 sm:$0xff]  ;;  %p524_p0 = scmp.ne.s32.totalorder %s375_s0, %s523_s4  ;;  %p529_p2 = scmp.lt.s32.totalorder %s523_s4, %s523_s4 }
  0x1c   :  { %467 = vmatpush3.bf16.msra.mxu1 %v512_v15 }
  0x1d   :  { %468 = vmatprep.subr.bf16.mxu1 %v547_v1  ;;  %p530_p3 = por %p529_p2, %p528_p1 }
  0x1e   :  { %451 = vmatpush3.bf16.msra.mxu0 %v506_v13 }
  0x1f   :  { %476 = vmatprep.subr.bf16.mxu0 %v547_v1  ;;  %p531_p4 = pnand %p530_p3, %p524_p0 }
  0x20   :  { %469 = vmatpush3.bf16.msra.mxu1 %v513_v17 }
  0x21   :  { %453 = vmatmul.mubr.bf16.vlgmr.msra.gmra.mrb[0].mxu0 %v46_v16  ;;  %470 = vmatprep.subr.bf16.mxu1 %v547_v1 }
  0x22   :  { %492 = vmatprep.mubr.msk.bf16.mxu0 %vm548_vm0, %v547_v1  ;;  %477 = vmatpush3.bf16.msra.mxu0 %v515_v19 }
  0x23   :  { %478 = vmatprep.subr.bf16.mxu0 %v547_v1 }
  0x24   :  { %471 = vmatpush3.bf16.msra.mxu1 %v514_v18 }
  0x26   :  { %479 = vmatpush3.bf16.msra.mxu0 %v516_v20 }
  0x27   :  { %480 = vmatprep.subr.bf16.mxu0 %v547_v1 }
  0x2a   :  { %481 = vmatpush3.bf16.msra.mxu0 %v517_v21 }
  0x2b   :  { %482 = vmatprep.subr.bf16.mxu0 %v547_v1 }
  0x2e   :  { %483 = vmatpush3.bf16.msra.mxu0 %v518_v22 }
  0x2f   :  { %484 = vmatprep.subr.bf16.mxu0 %v547_v1 }
  0x32   :  { %485 = vmatpush3.bf16.msra.mxu0 %v519_v23 }
  0x33   :  { %486 = vmatprep.subr.bf16.mxu0 %v547_v1 }
  0x36   :  { %487 = vmatpush3.bf16.msra.mxu0 %v520_v24 }
  0x37   :  { %488 = vmatprep.subr.bf16.mxu0 %v547_v1 }
  0x3a   :  { %489 = vmatpush3.bf16.msra.mxu0 %v521_v33 }
  0x3b   :  { %490 = vmatprep.subr.bf16.mxu0 %v547_v1 }
  0x3e   :  { %491 = vmatpush3.bf16.msra.mxu0 %v522_v34 }
  0xf4   :  { %v135_v26 = vpop.f32.mrb[0].mxu0 }
  0xf5   :  { %v136_v27 = vadd.f32 %v382_v25, %v135_v26  ;;  %v454_v28 = vpop.f32.mrb[1].mxu0 }
  0xf6   :  { %v138_v29 = vpop.f32.mrb[2].mxu0 }
  0xf7   :  { %v141_v30 = vmax.f32 %v136_v27, 0.0  ;;  %v455_v31 = vpop.f32.mrb[3].mxu0 }
  0xf9   :  { %v159_v32 = vpack.c.bf16 %v141_v30, %v141_v30 }
  0xfb   :  { %473 = vmatmul.mubr.bf16.vlgmr.msra.gmra.mrb[0].mxu1 %v159_v32 }
 0x1ce   :  { %v248_v36 = vpop.f32.mrb[0].mxu1 }
 0x1cf   :  { %v249_v37 = vadd.f32 %v391_v35, %v248_v36  ;;  %v474_v38 = vpop.f32.mrb[1].mxu1 }
 0x1d0   :  { %v251_v39 = vpop.f32.mrb[2].mxu1 }
 0x1d1   :  { %v254_v40 = vmax.f32 %v249_v37, 0.0  ;;  %v475_v41 = vpop.f32.mrb[3].mxu1 }
 0x1d3   :  { %v272_v42 = vpack.c.bf16 %v254_v40, %v254_v40 }
 0x1d5   :  { %493 = vmatmul.mubr.bf16.vlgmr.msra.gmra.mrb[4].mxu0 %v272_v42 }
 0x2a8   :  { %v361_v44 = vpop.f32.mrb[4].mxu0 }
 0x2a9   :  { %v362_v45 = vadd.f32 %v400_v43, %v361_v44  ;;  %v494_v46 = vpop.f32.mrb[5].mxu0 }
 0x2aa   :  { %v364_v47 = vpop.f32.mrb[6].mxu0 }
 0x2ab   :  { %367 = vst [vmem:[#allocation2] sm:$0xff] %v362_v45  ;;  %v495_v48 = vpop.f32.mrb[7].mxu0 }
 0x2ac   :  { %534 = shalt.err (!%p531_p4)
}
 0x2ad   :  { %s535_s6 = scalar_lea.hbm %s723_s7, 128 }
 0x2ae   :  { %p536_p5 = scmp.ne.s32.totalorder %s723_s7, %s535_s6  ;;  %p539_p6 = scmp.lt.u32.totalorder %s535_s6, %s723_s7 }
 0x2b0   :  { %p541_p7 = pnand %p539_p6, %p536_p5 }
 0x2b2   :  { %544 = shalt.err (!%p541_p7)
}
 0x2b3   :  { %377 = dma.vmem_to_hbm [thread:$0]  %s375_s0, 128, %s723_s7, [#allocation3]  }
 0x2b4   :  { %545 = dma.done.wait [#allocation3], 128  }
 0x2b5   :  { %546 = vsyncadd [#allocation3], 4294967168 }
 0x2b6   :  { %381 = vsyncpa [#allocation3], 1 }

</bundles_post_ra>
